<compile_context>
chip_gen: v7x
topology: tpu7x:2x2x1
jax: 0.10.0
libtpu: 0.0.40
codegen_flags: <defaults>
</compile_context>

<pallas_src>
import functools

import jax
import jax.numpy as jnp
from jax import lax
from jax.experimental import pallas as pl
from jax.experimental.pallas import tpu as pltpu

EPS = 1e-3  # BatchNorm1d eps from the module


def _linear_block_kernel(x_ref, w_ref, b_ref, gamma_ref, beta_ref, o_ref, acc_ref):
    k = pl.program_id(1)

    @pl.when(k == 0)
    def _():
        acc_ref[...] = jnp.zeros_like(acc_ref)

    # Linear (partial): bf16 operands on the MXU, f32 accumulation.
    acc_ref[...] += jnp.dot(
        x_ref[...].astype(jnp.bfloat16),
        w_ref[...].astype(jnp.bfloat16),
        preferred_element_type=jnp.float32,
    )

    @pl.when(k == pl.num_programs(1) - 1)
    def _():
        y = acc_ref[...] + b_ref[...]                      # (N, tn) + (1, tn)
        inv_n = 1.0 / y.shape[0]

        # Full-batch statistics per output feature (biased variance).
        mean = jnp.sum(y, axis=0, keepdims=True) * inv_n           # (1, tn)
        ex2 = jnp.sum(y * y, axis=0, keepdims=True) * inv_n        # (1, tn)
        var = jnp.maximum(ex2 - mean * mean, 0.0)

        # Fold the BN affine into per-feature scale/shift.
        scale = gamma_ref[...] * lax.rsqrt(var + EPS)              # (1, tn)
        shift = beta_ref[...] - mean * scale                       # (1, tn)

        o_ref[...] = jnp.maximum(y * scale + shift, 0.0).astype(o_ref.dtype)


def _round_up(a, b):
    return (a + b - 1) // b * b


@functools.partial(jax.jit, static_argnames=("tn", "tk", "out_dtype"))
def linear_block(x, weight_t, bias, gamma, beta, *, tn=256, tk=512, out_dtype=None):
    """x: (N, D_in); weight_t: (D_in, D_out) (pre-transposed); bias/gamma/beta: (D_out,)."""
    n, d_in = x.shape
    d_out = weight_t.shape[1]
    out_dtype = jnp.dtype(out_dtype) if out_dtype is not None else x.dtype

    # Lane-dense tile sizes (multiples of 128), clamped to the (padded) problem.
    tk = min(tk, _round_up(d_in, 128))
    tn = min(tn, _round_up(d_out, 128))
    d_in_p = _round_up(d_in, tk)
    d_out_p = _round_up(d_out, tn)

    # Zero-pad features; padded output columns are exactly 0 and sliced off.
    x_p = jnp.pad(x, ((0, 0), (0, d_in_p - d_in)))
    w_p = jnp.pad(weight_t, ((0, d_in_p - d_in), (0, d_out_p - d_out)))
    b_p = jnp.pad(bias.reshape(1, -1), ((0, 0), (0, d_out_p - d_out)))
    g_p = jnp.pad(gamma.reshape(1, -1), ((0, 0), (0, d_out_p - d_out)))
    be_p = jnp.pad(beta.reshape(1, -1), ((0, 0), (0, d_out_p - d_out)))

    grid = (d_out_p // tn, d_in_p // tk)

    # VMEM budget: double-buffered input tiles + double-buffered output tile
    # + resident f32 accumulator, with headroom. Clamped so it also fits the
    # 64 MiB physical VMEM on v7x.
    itemsize = 4
    est = (
        2 * (n * tk + tk * tn + 3 * tn) * itemsize
        + 2 * n * tn * out_dtype.itemsize
        + n * tn * 4
    )
    vmem_limit = int(min(max(1.5 * est + (2 << 20), 8 << 20), 48 << 20))

    cost = pl.CostEstimate(
        flops=2 * n * d_in_p * d_out_p,
        transcendentals=d_out_p,
        bytes_accessed=(x_p.size + w_p.size + 3 * d_out_p) * itemsize
        + n * d_out_p * out_dtype.itemsize,
    )

    out = pl.pallas_call(
        _linear_block_kernel,
        out_shape=jax.ShapeDtypeStruct((n, d_out_p), out_dtype),
        grid_spec=pltpu.PrefetchScalarGridSpec(
            num_scalar_prefetch=0,
            grid=grid,
            in_specs=[
                pl.BlockSpec((n, tk), lambda j, k: (0, k)),    # x
                pl.BlockSpec((tk, tn), lambda j, k: (k, j)),   # W (D_in, D_out)
                pl.BlockSpec((1, tn), lambda j, k: (0, j)),    # bias
                pl.BlockSpec((1, tn), lambda j, k: (0, j)),    # gamma
                pl.BlockSpec((1, tn), lambda j, k: (0, j)),    # beta
            ],
            out_specs=pl.BlockSpec((n, tn), lambda j, k: (0, j)),
            scratch_shapes=[pltpu.VMEM((n, tn), jnp.float32)],
        ),
        compiler_params=pltpu.CompilerParams(
            dimension_semantics=("parallel", "arbitrary"),
            vmem_limit_bytes=vmem_limit,
        ),
        cost_estimate=cost,
    )(x_p, w_p, b_p, g_p, be_p)

    return out[:, :d_out]


if __name__ == "__main__":
    # Small shapes implied by the module: 2-D input (batch, input_size).
    N, D_IN, D_OUT = 8, 32, 32

    key = jax.random.PRNGKey(0)
    k_x, k_w = jax.random.split(key)

    # Deterministic parameter init mirroring fc_init_:
    #   linear.weight ~ truncated_normal(-2, 2) * 0.01, linear.bias = 0
    #   BatchNorm affine defaults: gamma = 1, beta = 0
    w = 0.01 * jax.random.truncated_normal(k_w, -2.0, 2.0, (D_OUT, D_IN), jnp.float32)
    weight_t = w.T                                   # (D_IN, D_OUT) for x @ W
    bias = jnp.zeros((D_OUT,), jnp.float32)
    gamma = jnp.ones((D_OUT,), jnp.float32)
    beta = jnp.zeros((D_OUT,), jnp.float32)

    x = jax.random.normal(k_x, (N, D_IN), jnp.float32)

    out = linear_block(x, weight_t, bias, gamma, beta)
    out = jax.block_until_ready(out)

    # Pure-JAX reference of the same math (bf16 matmul operands, f32 accum).
    y_ref = jnp.dot(
        x.astype(jnp.bfloat16),
        weight_t.astype(jnp.bfloat16),
        preferred_element_type=jnp.float32,
    ) + bias
    m = jnp.mean(y_ref, axis=0, keepdims=True)
    v = jnp.mean((y_ref - m) ** 2, axis=0, keepdims=True)
    ref = jnp.maximum((y_ref - m) * lax.rsqrt(v + EPS) * gamma + beta, 0.0)

    assert out.shape == (N, D_OUT)
    assert jnp.allclose(out, ref, atol=1e-3, rtol=1e-3), (
        float(jnp.max(jnp.abs(out - ref)))
    )

    print("KERNEL_OK")
</pallas_src>

<mosaic_0001>
module attributes {stable_mosaic.version = 11 : i64} {
  func.func @_linear_block_kernel(%arg0: i32, %arg1: i32, %arg2: memref<8x128xf32, #tpu.memory_space<vmem>>, %arg3: memref<128x128xf32, #tpu.memory_space<vmem>>, %arg4: memref<1x128xf32, #tpu.memory_space<vmem>>, %arg5: memref<1x128xf32, #tpu.memory_space<vmem>>, %arg6: memref<1x128xf32, #tpu.memory_space<vmem>>, %arg7: memref<8x128xf32, #tpu.memory_space<vmem>>, %arg8: memref<8x128xf32, #tpu.memory_space<vmem>>) attributes {dimension_semantics = [#tpu.dimension_semantics<parallel>, #tpu.dimension_semantics<arbitrary>], iteration_bounds = array<i64: 1, 1>, scalar_prefetch = 0 : i64, scratch_operands = 1 : i64, tpu.core_type = #tpu.core_type<tc>, window_params = [{transform_indices = @transform_0, window_bounds = array<i64: 8, 128>}, {transform_indices = @transform_1, window_bounds = array<i64: 128, 128>}, {transform_indices = @transform_2, window_bounds = array<i64: 1, 128>}, {transform_indices = @transform_3, window_bounds = array<i64: 1, 128>}, {transform_indices = @transform_4, window_bounds = array<i64: 1, 128>}, {transform_indices = @transform_5, window_bounds = array<i64: 8, 128>}]} {
    %c0_i32 = arith.constant 0 : i32
    %0 = arith.cmpi eq, %arg1, %c0_i32 : i32
    %1 = arith.extui %0 : i1 to i32
    %c0_i32_0 = arith.constant 0 : i32
    %2 = arith.cmpi ne, %1, %c0_i32_0 : i32
    scf.if %2 {
      %cst_10 = arith.constant 0.000000e+00 : f32
      %14 = vector.broadcast %cst_10 : f32 to vector<8x128xf32>
      %c0_11 = arith.constant 0 : index
      %c0_12 = arith.constant 0 : index
      %15 = vector.load %arg8[%c0_11, %c0_12] : memref<8x128xf32, #tpu.memory_space<vmem>>, vector<8x128xf32>
      tpu.vector_store %arg8[%c0_11, %c0_12], %14 {strides = array<i32>} : memref<8x128xf32, #tpu.memory_space<vmem>>, vector<8x128xf32>,
    } else {
    }
    %c0 = arith.constant 0 : index
    %c0_1 = arith.constant 0 : index
    %3 = vector.load %arg8[%c0, %c0_1] : memref<8x128xf32, #tpu.memory_space<vmem>>, vector<8x128xf32>
    %c0_2 = arith.constant 0 : index
    %c0_3 = arith.constant 0 : index
    %4 = vector.load %arg2[%c0_2, %c0_3] : memref<8x128xf32, #tpu.memory_space<vmem>>, vector<8x128xf32>
    %5 = arith.truncf %4 : vector<8x128xf32> to vector<8x128xbf16>
    %c0_4 = arith.constant 0 : index
    %c0_5 = arith.constant 0 : index
    %6 = vector.load %arg3[%c0_4, %c0_5] : memref<128x128xf32, #tpu.memory_space<vmem>>, vector<128x128xf32>
    %7 = arith.truncf %6 : vector<128x128xf32> to vector<128x128xbf16>
    %cst = arith.constant dense<0.000000e+00> : vector<8x128xf32>
    %8 = tpu.matmul %5, %7, %cst {dimension_numbers = #tpu.dot_dimension_numbers<[1], [0], [0], [1], [0, 0, 1, 1], [], []>} : vector<8x128xbf16>, vector<128x128xbf16>, vector<8x128xf32> -> vector<8x128xf32>
    %9 = arith.addf %3, %8 : vector<8x128xf32>
    %c0_6 = arith.constant 0 : index
    %c0_7 = arith.constant 0 : index
    %10 = vector.load %arg8[%c0_6, %c0_7] : memref<8x128xf32, #tpu.memory_space<vmem>>, vector<8x128xf32>
    tpu.vector_store %arg8[%c0_6, %c0_7], %9 {strides = array<i32>} : memref<8x128xf32, #tpu.memory_space<vmem>>, vector<8x128xf32>,
    %c0_i32_8 = arith.constant 0 : i32
    %11 = arith.cmpi eq, %arg1, %c0_i32_8 : i32
    %12 = arith.extui %11 : i1 to i32
    %c0_i32_9 = arith.constant 0 : i32
    %13 = arith.cmpi ne, %12, %c0_i32_9 : i32
    scf.if %13 {
      %c0_10 = arith.constant 0 : index
      %c0_11 = arith.constant 0 : index
      %14 = vector.load %arg8[%c0_10, %c0_11] : memref<8x128xf32, #tpu.memory_space<vmem>>, vector<8x128xf32>
      %c0_12 = arith.constant 0 : index
      %c0_13 = arith.constant 0 : index
      %15 = vector.load %arg4[%c0_12, %c0_13] : memref<1x128xf32, #tpu.memory_space<vmem>>, vector<1x128xf32>
      %16 = vector.broadcast %15 : vector<1x128xf32> to vector<8x128xf32>
      %17 = arith.addf %14, %16 : vector<8x128xf32>
      %cst_14 = arith.constant dense<0.000000e+00> : vector<128xf32>
      %18 = vector.multi_reduction <add>, %17, %cst_14 [0] : vector<8x128xf32> to vector<128xf32>
      %19 = vector.shape_cast %18 : vector<128xf32> to vector<1x128xf32>
      %cst_15 = arith.constant 1.250000e-01 : f32
      %20 = vector.broadcast %cst_15 : f32 to vector<1x128xf32>
      %21 = arith.mulf %19, %20 : vector<1x128xf32>
      %22 = arith.mulf %17, %17 : vector<8x128xf32>
      %cst_16 = arith.constant dense<0.000000e+00> : vector<128xf32>
      %23 = vector.multi_reduction <add>, %22, %cst_16 [0] : vector<8x128xf32> to vector<128xf32>
      %24 = vector.shape_cast %23 : vector<128xf32> to vector<1x128xf32>
      %cst_17 = arith.constant 1.250000e-01 : f32
      %25 = vector.broadcast %cst_17 : f32 to vector<1x128xf32>
      %26 = arith.mulf %24, %25 : vector<1x128xf32>
      %27 = arith.mulf %21, %21 : vector<1x128xf32>
      %28 = arith.subf %26, %27 : vector<1x128xf32>
      %cst_18 = arith.constant 0.000000e+00 : f32
      %29 = vector.broadcast %cst_18 : f32 to vector<1x128xf32>
      %30 = arith.maximumf %28, %29 : vector<1x128xf32>
      %c0_19 = arith.constant 0 : index
      %c0_20 = arith.constant 0 : index
      %31 = vector.load %arg5[%c0_19, %c0_20] : memref<1x128xf32, #tpu.memory_space<vmem>>, vector<1x128xf32>
      %cst_21 = arith.constant 1.000000e-03 : f32
      %32 = vector.broadcast %cst_21 : f32 to vector<1x128xf32>
      %33 = arith.addf %30, %32 : vector<1x128xf32>
      %34 = math.rsqrt %33 : vector<1x128xf32>
      %35 = arith.mulf %31, %34 : vector<1x128xf32>
      %c0_22 = arith.constant 0 : index
      %c0_23 = arith.constant 0 : index
      %36 = vector.load %arg6[%c0_22, %c0_23] : memref<1x128xf32, #tpu.memory_space<vmem>>, vector<1x128xf32>
      %37 = arith.mulf %21, %35 : vector<1x128xf32>
      %38 = arith.subf %36, %37 : vector<1x128xf32>
      %39 = vector.broadcast %35 : vector<1x128xf32> to vector<8x128xf32>
      %40 = arith.mulf %17, %39 : vector<8x128xf32>
      %41 = vector.broadcast %38 : vector<1x128xf32> to vector<8x128xf32>
      %42 = arith.addf %40, %41 : vector<8x128xf32>
      %cst_24 = arith.constant 0.000000e+00 : f32
      %43 = vector.broadcast %cst_24 : f32 to vector<8x128xf32>
      %44 = arith.maximumf %42, %43 : vector<8x128xf32>
      %c0_25 = arith.constant 0 : index
      %c0_26 = arith.constant 0 : index
      %45 = vector.load %arg7[%c0_25, %c0_26] : memref<8x128xf32, #tpu.memory_space<vmem>>, vector<8x128xf32>
      tpu.vector_store %arg7[%c0_25, %c0_26], %44 {strides = array<i32>} : memref<8x128xf32, #tpu.memory_space<vmem>>, vector<8x128xf32>,
    } else {
    }
    return
  }
  func.func @transform_0(%arg0: i32, %arg1: i32) -> (i32, i32) {
    %c0_i32 = arith.constant 0 : i32
    %c0_i32_0 = arith.constant 0 : i32
    return %c0_i32, %arg1 : i32, i32
  }
  func.func @transform_1(%arg0: i32, %arg1: i32) -> (i32, i32) {
    %c0_i32 = arith.constant 0 : i32
    return %arg1, %arg0 : i32, i32
  }
  func.func @transform_2(%arg0: i32, %arg1: i32) -> (i32, i32) {
    %c0_i32 = arith.constant 0 : i32
    %c0_i32_0 = arith.constant 0 : i32
    return %c0_i32, %arg0 : i32, i32
  }
  func.func @transform_3(%arg0: i32, %arg1: i32) -> (i32, i32) {
    %c0_i32 = arith.constant 0 : i32
    %c0_i32_0 = arith.constant 0 : i32
    return %c0_i32, %arg0 : i32, i32
  }
  func.func @transform_4(%arg0: i32, %arg1: i32) -> (i32, i32) {
    %c0_i32 = arith.constant 0 : i32
    %c0_i32_0 = arith.constant 0 : i32
    return %c0_i32, %arg0 : i32, i32
  }
  func.func @transform_5(%arg0: i32, %arg1: i32) -> (i32, i32) {
    %c0_i32 = arith.constant 0 : i32
    %c0_i32_0 = arith.constant 0 : i32
    return %c0_i32, %arg0 : i32, i32
  }
}

</mosaic_0001>

<bundles_post_ra>
// kernel: linear_block.1
= control target key start
LH: loop header
LB: loop body
LE: loop exit
PB: predicated region body
PF: predicated region fallthrough
CT: control target
= control target key end

     0   :  { %v222_v3 = vmov 0.0   ;;  %vm223_vm0 = vmmov 0   ;;  %s327_s0 = inlined_call_operand.vmem [shape: f32[8,128], index: 0, kind: input, shape index: {}]   ;;  %s328_s1 = inlined_call_operand.vmem [shape: f32[128,128], index: 1, kind: input, shape index: {}]   ;;  %s329_s2 = inlined_call_operand.vmem [shape: f32[1,128], index: 2, kind: input, shape index: {}]   ;;  %s330_s3 = inlined_call_operand.vmem [shape: f32[1,128], index: 3, kind: input, shape index: {}]   ;;  %s331_s4 = inlined_call_operand.vmem [shape: f32[1,128], index: 4, kind: input, shape index: {}]   ;;  %s332_s5 = inlined_call_operand.hbm [shape: f32[8,128], index: 5, kind: output, shape index: {}]  }
   0x1   :  { %v30_v0 = vld [vmem:[%s328_s1] sm:$0xff]  ;;  %v31_v1 = vld [vmem:[%s328_s1 + $0x8] sm:$0xff]  ;;  %v32_v2 = vld [vmem:[%s328_s1 + $0x10] sm:$0xff]  ;;  %173 = vmatprep.subr.bf16.mxu0 %v222_v3  ;;  %189 = vmatprep.mubr.msk.bf16.mxu0 %vm223_vm0, %v222_v3 }
   0x2   :  { %v46_v4 = vpack.c.bf16 %v31_v1, %v30_v0  ;;  %v33_v5 = vld [vmem:[%s328_s1 + $0x18] sm:$0xff]  ;;  %v34_v7 = vld [vmem:[%s328_s1 + $0x20] sm:$0xff]  ;;  %v35_v8 = vld [vmem:[%s328_s1 + $0x28] sm:$0xff] }
   0x3   :  { %v47_v6 = vpack.c.bf16 %v33_v5, %v32_v2 }
   0x4   :  { %174 = vmatpush3.bf16.msra.mxu0 %v46_v4 }
   0x5   :  { %175 = vmatprep.subr.bf16.mxu0 %v222_v3 }
   0x6   :  { %10 = vsyncpa [#allocation4], 0  ;;  %v48_v9 = vpack.c.bf16 %v35_v8, %v34_v7  ;;  %v36_v10 = vld [vmem:[%s328_s1 + $0x30] sm:$0xff]  ;;  %v37_v11 = vld [vmem:[%s328_s1 + $0x38] sm:$0xff]  ;;  %v134_v52 = vlaneseq  ;;  %s224_s30 = smov [#allocation3]  }
   0x7   :  { %v49_v12 = vpack.c.bf16 %v37_v11, %v36_v10  ;;  %v38_v13 = vld [vmem:[%s328_s1 + $0x40] sm:$0xff]  ;;  %v39_v14 = vld [vmem:[%s328_s1 + $0x48] sm:$0xff]  ;;  %v40_v16 = vld [vmem:[%s328_s1 + $0x50] sm:$0xff]  ;;  %s155_s6 = sshll.u32 %s224_s30, 4  ;;  %s156_s6 = int_to_ptr.vmem [resolvable:$true] %s155_s6 }
   0x8   :  { %176 = vmatpush3.bf16.msra.mxu0 %v47_v6  ;;  %v50_v15 = vpack.c.bf16 %v39_v14, %v38_v13  ;;  %v41_v17 = vld [vmem:[%s328_s1 + $0x58] sm:$0xff]  ;;  %v42_v19 = vld [vmem:[%s328_s1 + $0x60] sm:$0xff]  ;;  %v43_v20 = vld [vmem:[%s328_s1 + $0x68] sm:$0xff]  ;;  %v135_v53 = vshrl.u32 %v134_v52, 7  ;;  %s198_s7 = scalar_lea.vmem %s156_s6, 128  ;;  %p203_p1 = scmp.lt.s32.totalorder %s156_s6, %s156_s6 }
   0x9   :  { %177 = vmatprep.subr.bf16.mxu0 %v222_v3  ;;  %v51_v18 = vpack.c.bf16 %v41_v17, %v40_v16  ;;  %v52_v21 = vpack.c.bf16 %v43_v20, %v42_v19  ;;  %v44_v22 = vld [vmem:[%s328_s1 + $0x70] sm:$0xff]  ;;  %v45_v23 = vld [vmem:[%s328_s1 + $0x78] sm:$0xff]  ;;  %v28_v25 = vld [vmem:[%s327_s0] sm:$0xff]  ;;  %p199_p0 = scmp.ne.s32.totalorder %s156_s6, %s198_s7  ;;  %p204_p2 = scmp.lt.s32.totalorder %s198_s7, %s198_s7 }
   0xa   :  { %v53_v24 = vpack.c.bf16 %v45_v23, %v44_v22  ;;  %v29_v26 = vpack.c.bf16 %v28_v25, %v28_v25  ;;  %v163_v27 = vld [vmem:[%s329_s2] ss:$0 sm:$0xff]  ;;  %v136_v55 = vsub.s32 0, %v135_v53 }
   0xb   :  { %v126_v54 = vld [vmem:[%s330_s3] sm:$0x1]  ;;  %p205_p3 = por %p204_p2, %p203_p1 }
   0xc   :  { %178 = vmatpush3.bf16.msra.mxu0 %v48_v9  ;;  %v130_v58 = vld [vmem:[%s331_s4] sm:$0x1] }
   0xd   :  { %179 = vmatprep.subr.bf16.mxu0 %v222_v3  ;;  %p206_p4 = pnand %p205_p3, %p199_p0 }
  0x10   :  { %180 = vmatpush3.bf16.msra.mxu0 %v49_v12 }
  0x11   :  { %181 = vmatprep.subr.bf16.mxu0 %v222_v3 }
  0x14   :  { %182 = vmatpush3.bf16.msra.mxu0 %v50_v15 }
  0x15   :  { %183 = vmatprep.subr.bf16.mxu0 %v222_v3 }
  0x18   :  { %184 = vmatpush3.bf16.msra.mxu0 %v51_v18 }
  0x19   :  { %185 = vmatprep.subr.bf16.mxu0 %v222_v3 }
  0x1c   :  { %186 = vmatpush3.bf16.msra.mxu0 %v52_v21 }
  0x1d   :  { %187 = vmatprep.subr.bf16.mxu0 %v222_v3 }
  0x20   :  { %188 = vmatpush3.bf16.msra.mxu0 %v53_v24 }
  0x23   :  { %190 = vmatmul.mubr.bf16.vlgmr.msra.gmra.mrb[0].mxu0 %v29_v26 }
  0xf6   :  { %v88_v28 = vpop.f32.mrb[0].mxu0 }
  0xf7   :  { %v107_v29 = vadd.f32 %v163_v27, %v88_v28  ;;  %v191_v30 = vpop.f32.mrb[1].mxu0 }
  0xf8   :  { %v91_v31 = vpop.f32.mrb[2].mxu0 }
  0xf9   :  { %v108_v32 = vrot.slane %v107_v29, 4  ;;  %v115_v33 = vmul.f32 %v107_v29, %v107_v29  ;;  %v192_v34 = vpop.f32.mrb[3].mxu0 }
  0xfb   :  { %v109_v35 = vadd.f32 %v108_v32, %v107_v29  ;;  %v116_v36 = vrot.slane %v115_v33, 4 }
  0xfd   :  { %v110_v37 = vrot.slane %v109_v35, 2  ;;  %v117_v38 = vadd.f32 %v116_v36, %v115_v33 }
  0xff   :  { %v111_v39 = vadd.f32 %v110_v37, %v109_v35  ;;  %v118_v40 = vrot.slane %v117_v38, 2 }
 0x101   :  { %v112_v41 = vrot.slane %v111_v39, 1  ;;  %v119_v42 = vadd.f32 %v118_v40, %v117_v38 }
 0x103   :  { %v120_v43 = vrot.slane %v119_v42, 1  ;;  %v113_v44 = vadd.f32 %v112_v41, %v111_v39 }
 0x105   :  { %v121_v45 = vadd.f32 %v120_v43, %v119_v42  ;;  %v114_v46 = vmul.f32 0.125, %v113_v44 }
 0x107   :  { %v122_v47 = vmul.f32 0.125, %v121_v45  ;;  %v123_v48 = vmul.f32 %v114_v46, %v114_v46 }
 0x109   :  { %v124_v49 = vsub.f32 %v122_v47, %v123_v48 }
 0x10b   :  { %v125_v50 = vmax.f32 %v124_v49, 0.0 }
 0x10d   :  { %v127_v51 = vadd.f32 0.001, %v125_v50 }
 0x10f   :  { %196 = vrsqrt.f32 %v127_v51 }
 0x119   :  { %v197_v56 = vpop.eup %196 }
 0x11a   :  { %v129_v57 = vmul.f32 %v197_v56, %v126_v54 }
 0x11c   :  { %v131_v59 = vmul.f32 %v129_v57, %v114_v46  ;;  %v137_v60 = vrot.slane %v129_v57, %v136_v55 }
 0x11e   :  { %v132_v61 = vsub.f32 %v130_v58, %v131_v59  ;;  %v139_v62 = vmul.f32 %v137_v60, %v107_v29 }
 0x120   :  { %v144_v63 = vrot.slane %v132_v61, %v136_v55 }
 0x122   :  { %v146_v0 = vadd.f32 %v144_v63, %v139_v62 }
 0x124   :  { %v147_v1 = vmax.f32 %v146_v0, 0.0 }
 0x126   :  { %148 = vst [vmem:[#allocation3] sm:$0xff] %v147_v1 }
 0x127   :  { %209 = shalt.err (!%p206_p4)
}
 0x128   :  { %s210_s8 = scalar_lea.hbm %s332_s5, 128 }
 0x129   :  { %p211_p5 = scmp.ne.s32.totalorder %s332_s5, %s210_s8  ;;  %p214_p6 = scmp.lt.u32.totalorder %s210_s8, %s332_s5 }
 0x12b   :  { %p216_p7 = pnand %p214_p6, %p211_p5 }
 0x12d   :  { %219 = shalt.err (!%p216_p7)
}
 0x12e   :  { %158 = dma.vmem_to_hbm [thread:$0]  %s156_s6, 128, %s332_s5, [#allocation4]  }
 0x12f   :  { %220 = dma.done.wait [#allocation4], 128  }
 0x130   :  { %221 = vsyncadd [#allocation4], 4294967168 }
 0x131   :  { %162 = vsyncpa [#allocation4], 1 }

</bundles_post_ra>
